<compile_context>
chip_gen: v7x
topology: tpu7x:2x2x1
jax: 0.10.0
libtpu: 0.0.40
codegen_flags: <defaults>
</compile_context>

<pallas_src>
import functools

import jax
import jax.numpy as jnp
from jax.experimental import pallas as pl
from jax.experimental.pallas import tpu as pltpu


_VMEM_BUDGET_FRACTION = 0.65   # fraction of physical VMEM the tile chooser plans for
_VMEM_LIMIT_FRACTION = 0.78    # scoped-vmem ceiling (~100 MiB v5e/v6e, ~50 MiB v7x)


def _vmem_capacity_bytes():
    """Physical per-core VMEM; conservative v7x floor if the query is unavailable."""
    try:
        return int(pltpu.get_tpu_info().vmem_capacity_bytes)
    except Exception:
        return 64 * 1024 * 1024


def _choose_tiles(B, C, H, x_isz, w_isz, out_isz, vmem_cap):
    """Pick (tb, tk): batch (M) tile and hidden/reduction (K) tile."""
    budget = int(vmem_cap * _VMEM_BUDGET_FRACTION)

    def fixed_bytes(tb):
        return (2 * tb * C * x_isz        # pipelined x tiles
                + 2 * tb * H * out_isz    # pipelined out tiles
                + 2 * C * H * 4           # 0/1 repeat matrix (constant index, 2x counted)
                + 2 * H * 4               # b2
                + tb * H * 4)             # f32 accumulator (only used when K is tiled)

    # --- batch tile: big tiles amortize per-step overhead and, when w2 has to
    # be streamed, cut w2 HBM re-reads per batch element.
    tb = B if B <= 512 else 512
    while tb > 8 and fixed_bytes(tb) + 2 * 128 * (C + H + 1) * w_isz > budget:
        tb = max(8, (tb // 2 // 8) * 8)

    # --- K tile: keep w2 fully resident whenever it fits (counted as if
    # double-buffered, so this is safe even without pl.Buffered(1)).
    resident_cost = fixed_bytes(tb) + 2 * (C * H + H * H + H) * w_isz
    if resident_cost <= budget:
        tk = H
    else:
        # Stream (C, tk) w1 slabs and (tk, H) w2 slabs.  tk must divide H
        # exactly: the K axis is a reduction, and ragged K blocks would fold
        # unspecified pad values into the accumulator.
        avail = max(budget - fixed_bytes(tb), 2 * 128 * (C + H + 1) * w_isz)
        tk_cap = avail // (2 * (C + H + 1) * w_isz)
        tk = None
        t = 128
        while t <= H:
            if H % t == 0 and t <= tk_cap:
                tk = t
            t += 128
        if tk is None:
            tk = H if H % 128 != 0 else 128

    # --- v7x megacore: with w2 resident, splitting a mid-sized batch into two
    # "parallel" tiles lets both TensorCores work; on 1-TC parts it only costs
    # one extra grid step.
    if tk == H and 256 <= B <= 512:
        half = (B + 1) // 2
        tb = min(B, ((half + 7) // 8) * 8)

    return tb, tk


def _input_embeding_kernel(x_ref, r_ref, w1_ref, b1_ref, w2_ref, b2_ref, alpha_ref,
                           o_ref, *scratch, nk, embed_precision, skip_precision):
    # x_ref:  (TB, C)    r_ref:  (C, H)   0/1 repeat matrix (resident)
    # w1_ref: (C, TK)    b1_ref: (1, TK)  column slabs, streamed over K
    # w2_ref: (TK, H)    b2_ref: (1, H)   w2 row slab (resident when TK == H)
    # alpha_ref: (1,) in SMEM
    # o_ref:  (TB, H)    scratch: ((TB, H) f32 accumulator,) iff nk > 1
    k = pl.program_id(1)
    x = x_ref[...]

    # Embedding path for this K slab:
    #   h1_k   = ReLU(ReLU(x) @ w1[:, slab] + b1[slab])
    #   contrib = h1_k @ w2[slab, :]
    xr = jnp.maximum(x, 0.0)
    h1 = jnp.dot(xr.astype(w1_ref.dtype), w1_ref[...],
                 preferred_element_type=jnp.float32, precision=embed_precision)
    h1 = jnp.maximum(h1 + b1_ref[...], 0.0)
    contrib = jnp.dot(h1.astype(w2_ref.dtype), w2_ref[...],
                      preferred_element_type=jnp.float32, precision=embed_precision)

    def _finalize(total):
        # skip = repeat(x, 'b c -> b (n c)') as a lane-dense MXU matmul x @ R.
        # HIGHEST precision => exact copy of x (R is exactly 0/1).
        skip = jnp.dot(x.astype(jnp.float32), r_ref[...],
                       preferred_element_type=jnp.float32, precision=skip_precision)
        a = alpha_ref[0]
        o_ref[...] = (skip + a * (total + b2_ref[...])).astype(o_ref.dtype)

    if nk == 1:
        # Single K step: no accumulator traffic at all.
        _finalize(contrib)
    else:
        acc_ref = scratch[0]

        @pl.when(k == 0)
        def _():
            acc_ref[...] = contrib            # direct store; no zero + RMW

        @pl.when(jnp.logical_and(k > 0, k < nk - 1))
        def _():
            acc_ref[...] += contrib

        @pl.when(k == nk - 1)
        def _():
            _finalize(acc_ref[...] + contrib)  # skip the final acc store/load


def input_embeding(x, w1, b1, w2, b2, alpha, *, out_dtype=None,
                   embed_precision=None, tb=None, tk=None):
    """Forward pass of InputEmbeding.

    x: (B, C); w1: (C, H); b1: (H,); w2: (H, H); b2: (H,); alpha: (1,) scalar.
    Weights may be f32 or bf16 (dots run in the weight dtype, accumulate f32).
    Pass out_dtype=jnp.bfloat16 if downstream accepts it (halves output HBM
    traffic); pass embed_precision=jax.lax.Precision.HIGHEST for f32-exact
    parity of the MLP branch with the PyTorch module.
    """
    B, C = x.shape
    Cw, H = w1.shape
    assert C == Cw and w2.shape == (H, H)
    assert H % C == 0, "num_hidden must be a multiple of num_inputs (einops repeat)"
    out_dtype = x.dtype if out_dtype is None else out_dtype

    vmem_cap = _vmem_capacity_bytes()
    w_isz = max(jnp.dtype(w1.dtype).itemsize, jnp.dtype(w2.dtype).itemsize)
    out_isz = jnp.dtype(out_dtype).itemsize
    auto_tb, auto_tk = _choose_tiles(B, C, H, jnp.dtype(x.dtype).itemsize,
                                     w_isz, out_isz, vmem_cap)
    if tb is None:
        tb = auto_tb
    else:
        tb = min(int(tb), B)
        if tb < B:
            tb = max(8, (tb // 8) * 8)     # (8, 128) block-shape rule on the batch dim
    tk = auto_tk if tk is None else int(tk)
    assert H % tk == 0 and (tk % 128 == 0 or tk == H)

    nb = pl.cdiv(B, tb)                    # ragged tail handled by boundary blocks
    nk = H // tk
    grid = (nb, nk)

    # 0/1 repeat matrix: (x @ R)[:, j] == x[:, j % C]  (== repeat 'b c -> b (n c)').
    rep = jnp.tile(jnp.eye(C, dtype=jnp.float32), (1, H // C))
    b1_2d = b1.reshape(1, H).astype(jnp.float32)
    b2_2d = b2.reshape(1, H).astype(jnp.float32)
    alpha_1 = jnp.asarray(alpha, dtype=jnp.float32).reshape(1)

    # Scoped-VMEM limit: cover the estimated footprint with margin, stay well
    # under physical VMEM (v5e/v6e 128 MiB, v7x 64 MiB).
    needed = (2 * tb * C * jnp.dtype(x.dtype).itemsize
              + 2 * tb * H * out_isz
              + 2 * C * H * 4 + 2 * H * 4
              + 2 * (C * tk + tk * H + tk) * w_isz
              + (tb * H * 4 if nk > 1 else 0))
    vmem_limit = int(min(vmem_cap * _VMEM_LIMIT_FRACTION,
                         max(needed * 1.25, 16 * 1024 * 1024)))

    kernel = functools.partial(_input_embeding_kernel, nk=nk,
                               embed_precision=embed_precision,
                               skip_precision=jax.lax.Precision.HIGHEST)

    # NOTE: the constant-index operands (rep, b2, and w1/w2 when nk == 1) are
    # conservatively budgeted as double-buffered; pipeline_mode=pl.Buffered(1)
    # could reclaim that headroom on v7x if needed.
    return pl.pallas_call(
        kernel,
        out_shape=jax.ShapeDtypeStruct((B, H), out_dtype),
        grid=grid,
        in_specs=[
            pl.BlockSpec((tb, C), lambda i, k: (i, 0)),          # x: batch-tiled
            pl.BlockSpec((C, H), lambda i, k: (0, 0)),           # repeat matrix (resident)
            pl.BlockSpec((C, tk), lambda i, k: (0, k)),          # w1 column slab
            pl.BlockSpec((1, tk), lambda i, k: (0, k)),          # b1 slab
            pl.BlockSpec((tk, H), lambda i, k: (k, 0)),          # w2 row slab (resident if nk==1)
            pl.BlockSpec((1, H), lambda i, k: (0, 0)),           # b2 (resident)
            pl.BlockSpec(memory_space=pltpu.MemorySpace.SMEM),   # alpha scalar
        ],
        out_specs=pl.BlockSpec((tb, H), lambda i, k: (i, 0)),
        scratch_shapes=([] if nk == 1 else [pltpu.VMEM((tb, H), jnp.float32)]),
        compiler_params=pltpu.CompilerParams(
            dimension_semantics=("parallel", "arbitrary"),
            vmem_limit_bytes=vmem_limit,
        ),
    )(x, rep, w1, b1_2d, w2, b2_2d, alpha_1)


def input_embeding_ref(x, w1, b1, w2, b2, alpha):
    """Pure-JAX reference (true f32 matmuls)."""
    C = x.shape[-1]
    H = w1.shape[1]
    hp = jax.lax.Precision.HIGHEST
    h = jnp.maximum(x, 0.0)
    h = jnp.maximum(jnp.dot(h, w1, precision=hp) + b1, 0.0)
    h = jnp.dot(h, w2, precision=hp) + b2
    skip = jnp.tile(x, (1, H // C))
    return skip + alpha[0] * h


if __name__ == "__main__":
    key = jax.random.PRNGKey(0)
    # batch, num_inputs, num_hidden.  H is a multiple of 128 (lane-dense output
    # stores) while staying small for the demo.
    B, C, H = 16, 4, 128

    kx, k1, k2, k3, k4 = jax.random.split(key, 5)
    x = jax.random.normal(kx, (B, C), dtype=jnp.float32)
    w1 = jax.random.normal(k1, (C, H), dtype=jnp.float32) * 0.1
    b1 = jax.random.normal(k2, (H,), dtype=jnp.float32) * 0.1
    w2 = jax.random.normal(k3, (H, H), dtype=jnp.float32) * 0.1
    b2 = jax.random.normal(k4, (H,), dtype=jnp.float32) * 0.1

    # 1) Module as-initialized: alpha = 1e-12 (output dominated by the exact skip).
    alpha0 = jnp.zeros((1,), dtype=jnp.float32) + 1e-12
    out0 = jax.block_until_ready(input_embeding(x, w1, b1, w2, b2, alpha0))
    ref0 = input_embeding_ref(x, w1, b1, w2, b2, alpha0)
    assert out0.shape == (B, H)
    assert jnp.allclose(out0, ref0, atol=1e-5, rtol=1e-5), \
        float(jnp.max(jnp.abs(out0 - ref0)))

    # 2) Non-trivial alpha exercising the MLP branch, full-precision MXU passes
    #    so the comparison against the f32 reference stays tight.
    alpha1 = jnp.full((1,), 0.5, dtype=jnp.float32)
    out1 = jax.block_until_ready(
        input_embeding(x, w1, b1, w2, b2, alpha1,
                       embed_precision=jax.lax.Precision.HIGHEST))
    ref1 = input_embeding_ref(x, w1, b1, w2, b2, alpha1)
    assert jnp.allclose(out1, ref1, atol=1e-4, rtol=1e-4), \
        float(jnp.max(jnp.abs(out1 - ref1)))

    print("KERNEL_OK")
</pallas_src>

<mosaic_0001>
module attributes {stable_mosaic.version = 11 : i64} {
  func.func @_input_embeding_kernel(%arg0: i32, %arg1: i32, %arg2: memref<16x4xf32, #tpu.memory_space<vmem>>, %arg3: memref<4x128xf32, #tpu.memory_space<vmem>>, %arg4: memref<4x128xf32, #tpu.memory_space<vmem>>, %arg5: memref<1x128xf32, #tpu.memory_space<vmem>>, %arg6: memref<128x128xf32, #tpu.memory_space<vmem>>, %arg7: memref<1x128xf32, #tpu.memory_space<vmem>>, %arg8: memref<1xf32, #tpu.memory_space<smem>>, %arg9: memref<16x128xf32, #tpu.memory_space<vmem>>) attributes {dimension_semantics = [#tpu.dimension_semantics<parallel>, #tpu.dimension_semantics<arbitrary>], iteration_bounds = array<i64: 1, 1>, scalar_prefetch = 0 : i64, scratch_operands = 0 : i64, tpu.core_type = #tpu.core_type<tc>, window_params = [{transform_indices = @transform_0, window_bounds = array<i64: 16, 4>}, {pipeline_mode = #tpu.pipeline_mode<synchronous>, transform_indices = @transform_1, window_bounds = array<i64: 4, 128>}, {transform_indices = @transform_2, window_bounds = array<i64: 4, 128>}, {transform_indices = @transform_3, window_bounds = array<i64: 1, 128>}, {transform_indices = @transform_4, window_bounds = array<i64: 128, 128>}, {pipeline_mode = #tpu.pipeline_mode<synchronous>, transform_indices = @transform_5, window_bounds = array<i64: 1, 128>}, {transform_indices = @transform_6, window_bounds = array<i64: 1>}, {transform_indices = @transform_7, window_bounds = array<i64: 16, 128>}]} {
    %c0 = arith.constant 0 : index
    %c0_0 = arith.constant 0 : index
    %0 = vector.load %arg2[%c0, %c0_0] : memref<16x4xf32, #tpu.memory_space<vmem>>, vector<16x4xf32>
    %cst = arith.constant 0.000000e+00 : f32
    %1 = vector.broadcast %cst : f32 to vector<16x4xf32>
    %2 = arith.maximumf %0, %1 : vector<16x4xf32>
    %c0_1 = arith.constant 0 : index
    %c0_2 = arith.constant 0 : index
    %3 = vector.load %arg4[%c0_1, %c0_2] : memref<4x128xf32, #tpu.memory_space<vmem>>, vector<4x128xf32>
    %cst_3 = arith.constant dense<0.000000e+00> : vector<16x128xf32>
    %4 = tpu.matmul %2, %3, %cst_3 {dimension_numbers = #tpu.dot_dimension_numbers<[1], [0], [0], [1], [0, 0, 1, 1], [], []>} : vector<16x4xf32>, vector<4x128xf32>, vector<16x128xf32> -> vector<16x128xf32>
    %c0_4 = arith.constant 0 : index
    %c0_5 = arith.constant 0 : index
    %5 = vector.load %arg5[%c0_4, %c0_5] : memref<1x128xf32, #tpu.memory_space<vmem>>, vector<1x128xf32>
    %6 = vector.broadcast %5 : vector<1x128xf32> to vector<16x128xf32>
    %7 = arith.addf %4, %6 : vector<16x128xf32>
    %cst_6 = arith.constant 0.000000e+00 : f32
    %8 = vector.broadcast %cst_6 : f32 to vector<16x128xf32>
    %9 = arith.maximumf %7, %8 : vector<16x128xf32>
    %c0_7 = arith.constant 0 : index
    %c0_8 = arith.constant 0 : index
    %10 = vector.load %arg6[%c0_7, %c0_8] : memref<128x128xf32, #tpu.memory_space<vmem>>, vector<128x128xf32>
    %cst_9 = arith.constant dense<0.000000e+00> : vector<16x128xf32>
    %11 = tpu.matmul %9, %10, %cst_9 {dimension_numbers = #tpu.dot_dimension_numbers<[1], [0], [0], [1], [0, 0, 1, 1], [], []>} : vector<16x128xf32>, vector<128x128xf32>, vector<16x128xf32> -> vector<16x128xf32>
    %c0_10 = arith.constant 0 : index
    %c0_11 = arith.constant 0 : index
    %12 = vector.load %arg3[%c0_10, %c0_11] : memref<4x128xf32, #tpu.memory_space<vmem>>, vector<4x128xf32>
    %cst_12 = arith.constant dense<0.000000e+00> : vector<16x128xf32>
    %13 = tpu.matmul %0, %12, %cst_12 {dimension_numbers = #tpu.dot_dimension_numbers<[1], [0], [0], [1], [0, 0, 1, 1], [], []>, precision = #tpu.contract_precision<fp32>} : vector<16x4xf32>, vector<4x128xf32>, vector<16x128xf32> -> vector<16x128xf32>
    %c0_13 = arith.constant 0 : index
    %14 = memref.load %arg8[%c0_13] : memref<1xf32, #tpu.memory_space<smem>>
    %c0_14 = arith.constant 0 : index
    %c0_15 = arith.constant 0 : index
    %15 = vector.load %arg7[%c0_14, %c0_15] : memref<1x128xf32, #tpu.memory_space<vmem>>, vector<1x128xf32>
    %16 = vector.broadcast %15 : vector<1x128xf32> to vector<16x128xf32>
    %17 = arith.addf %11, %16 : vector<16x128xf32>
    %18 = vector.broadcast %14 : f32 to vector<16x128xf32>
    %19 = arith.mulf %18, %17 : vector<16x128xf32>
    %20 = arith.addf %13, %19 : vector<16x128xf32>
    %c0_16 = arith.constant 0 : index
    %c0_17 = arith.constant 0 : index
    %21 = vector.load %arg9[%c0_16, %c0_17] : memref<16x128xf32, #tpu.memory_space<vmem>>, vector<16x128xf32>
    tpu.vector_store %arg9[%c0_16, %c0_17], %20 {strides = array<i32>} : memref<16x128xf32, #tpu.memory_space<vmem>>, vector<16x128xf32>,
    return
  }
  func.func @transform_0(%arg0: i32, %arg1: i32) -> (i32, i32) {
    %c0_i32 = arith.constant 0 : i32
    %c0_i32_0 = arith.constant 0 : i32
    return %arg0, %c0_i32 : i32, i32
  }
  func.func @transform_1(%arg0: i32, %arg1: i32) -> (i32, i32) {
    %c0_i32 = arith.constant 0 : i32
    %c0_i32_0 = arith.constant 0 : i32
    %c0_i32_1 = arith.constant 0 : i32
    return %c0_i32, %c0_i32_0 : i32, i32
  }
  func.func @transform_2(%arg0: i32, %arg1: i32) -> (i32, i32) {
    %c0_i32 = arith.constant 0 : i32
    %c0_i32_0 = arith.constant 0 : i32
    return %c0_i32, %arg1 : i32, i32
  }
  func.func @transform_3(%arg0: i32, %arg1: i32) -> (i32, i32) {
    %c0_i32 = arith.constant 0 : i32
    %c0_i32_0 = arith.constant 0 : i32
    return %c0_i32, %arg1 : i32, i32
  }
  func.func @transform_4(%arg0: i32, %arg1: i32) -> (i32, i32) {
    %c0_i32 = arith.constant 0 : i32
    %c0_i32_0 = arith.constant 0 : i32
    return %arg1, %c0_i32 : i32, i32
  }
  func.func @transform_5(%arg0: i32, %arg1: i32) -> (i32, i32) {
    %c0_i32 = arith.constant 0 : i32
    %c0_i32_0 = arith.constant 0 : i32
    %c0_i32_1 = arith.constant 0 : i32
    return %c0_i32, %c0_i32_0 : i32, i32
  }
  func.func @transform_6(%arg0: i32, %arg1: i32) -> i32 {
    %c0_i32 = arith.constant 0 : i32
    %c0_i32_0 = arith.constant 0 : i32
    return %c0_i32 : i32
  }
  func.func @transform_7(%arg0: i32, %arg1: i32) -> (i32, i32) {
    %c0_i32 = arith.constant 0 : i32
    %c0_i32_0 = arith.constant 0 : i32
    return %arg0, %c0_i32 : i32, i32
  }
}

</mosaic_0001>

<bundles_post_ra>
// kernel: tpu_custom_call.1
= control target key start
LH: loop header
LB: loop body
LE: loop exit
PB: predicated region body
PF: predicated region fallthrough
CT: control target
= control target key end

     0   :  { %13 = vsyncpa [#allocation4], 0  ;;  %s1092_s0 = inlined_call_operand.vmem [shape: f32[16,4], index: 0, kind: input, shape index: {}]   ;;  %s1093_s1 = inlined_call_operand.vmem [shape: f32[4,128], index: 1, kind: input, shape index: {}]   ;;  %s1094_s2 = inlined_call_operand.vmem [shape: f32[4,128], index: 2, kind: input, shape index: {}]   ;;  %s1095_s3 = inlined_call_operand.vmem [shape: f32[1,128], index: 3, kind: input, shape index: {}]   ;;  %s1096_s4 = inlined_call_operand.hbm [shape: f32[128,128], index: 4, kind: input, shape index: {}]   ;;  %s1097_s5 = inlined_call_operand.vmem [shape: f32[1,128], index: 5, kind: input, shape index: {}]   ;;  %s1098_s6 = inlined_call_operand.<no memory space> [shape: f32[1], index: 6, kind: input, shape index: {}]   ;;  %s1099_s7 = inlined_call_operand.hbm [shape: f32[16,128], index: 7, kind: output, shape index: {}]  }
   0x1   :  { %14 = vsyncpa [#allocation5], 0  ;;  %s972_s24 = smov [#allocation3]   ;;  %s924_s28 = scalar_lea.hbm %s1096_s4, 2048 }
   0x2   :  { %s28_s25 = sshll.u32 %s972_s24, 4  ;;  %p925_p0 = scmp.ne.s32.totalorder %s1096_s4, %s924_s28  ;;  %s29_s25 = int_to_ptr.vmem [resolvable:$true] %s28_s25 }
   0x3   :  { %p928_p1 = scmp.lt.u32.totalorder %s924_s28, %s1096_s4 }
   0x5   :  { %p930_p2 = pnand %p928_p1, %p925_p0 }
   0x7   :  { %933 = shalt.err (!%p930_p2)
}
   0x8   :  { %s934_s10 = scalar_lea.vmem %s29_s25, 2048  ;;  %p939_p4 = scmp.lt.s32.totalorder %s29_s25, %s29_s25 }
   0x9   :  { %p935_p3 = scmp.ne.s32.totalorder %s29_s25, %s934_s10  ;;  %p940_p5 = scmp.lt.s32.totalorder %s934_s10, %s934_s10 }
   0xb   :  { %p941_p6 = por %p940_p5, %p939_p4 }
   0xd   :  { %p942_p7 = pnand %p941_p6, %p935_p3 }
   0xf   :  { %945 = shalt.err (!%p942_p7)
}
  0x10   :  { %s973_s11 = smov 128   ;;  %s974_s12 = smov 8  }
  0x11   :  { %34 = dma.hbm_to_vmem [thread:$0]  %s1096_s4, 2048, %s29_s25, [#allocation4], %s973_s11, %s973_s11, %s974_s12  }
  0x12   :  { %968 = dma.done.wait [#allocation4], 2048  }
  0x13   :  { %969 = vsyncadd [#allocation4], 4294965248  ;;  %vm61_vm0 = vcmask 1043456   ;;  %v46_v0 = vld [vmem:[%s1094_s2] sm:$0xf]  ;;  %vm54_vm1 = vcmask 31744   ;;  %v242_v59 = vstv %s1098_s6 }
  0x14   :  { %v158_v1 = vld [vmem:[%s1093_s1] sm:$0xf]  ;;  %806 = vmatprep.subr.msk.mxu0 %vm61_vm0, %v46_v0  ;;  %v43_v4 = vld [vmem:[%s1092_s0 + $0x8] sm:$0xff]  ;;  %v144_v13 = vld [vmem:[#allocation3 + $0x10] sm:$0xff] }
  0x15   :  { %v42_v2 = vld [vmem:[%s1092_s0] sm:$0xff]  ;;  %v252_v3 = vsel %vm61_vm0, %v158_v1, 0  ;;  %v143_v8 = vld [vmem:[#allocation3 + $0x8] sm:$0xff]  ;;  %807 = vmatpush3.msk.msra.mxu0 %vm61_vm0, %v46_v0  ;;  %v249_v10 = vsel %vm54_vm1, %v43_v4, 0  ;;  %v45_v12 = vmax.f32 %v43_v4, 0.0  ;;  %v145_v14 = vld [vmem:[#allocation3 + $0x18] sm:$0xff] }
  0x16   :  { %v44_v5 = vmax.f32 %v42_v2, 0.0  ;;  %v246_v6 = vsel %vm54_vm1, %v42_v2, 0  ;;  %v142_v7 = vld [vmem:[#allocation3] sm:$0xff]  ;;  %v1044_v9 = vand.u32 4294901760, %v252_v3  ;;  %v1050_v15 = vand.u32 4294901760, %v249_v10  ;;  %v147_v21 = vld [vmem:[#allocation3 + $0x28] sm:$0xff] }
  0x17   :  { %v1047_v11 = vand.u32 4294901760, %v246_v6  ;;  %v876_v16 = vpack.c.bf16 %v143_v8, %v142_v7  ;;  %v880_v17 = vpack.c.bf16 %v145_v14, %v144_v13  ;;  %v146_v20 = vld [vmem:[#allocation3 + $0x20] sm:$0xff]  ;;  %v148_v30 = vld [vmem:[#allocation3 + $0x30] sm:$0xff]  ;;  %v149_v31 = vld [vmem:[#allocation3 + $0x38] sm:$0xff] }
  0x18   :  { %808 = vmatprep.mubr.msk.f32.mxu0 %vm54_vm1, %v44_v5  ;;  %v342_v18 = vsub.f32 %v252_v3, %v1044_v9  ;;  %846 = vmatprep.subr.mxu0 %v1044_v9  ;;  %v331_v22 = vsub.f32 %v249_v10, %v1050_v15  ;;  %v884_v26 = vpack.c.bf16 %v147_v21, %v146_v20  ;;  %v150_v36 = vld [vmem:[#allocation3 + $0x40] sm:$0xff]  ;;  %v151_v37 = vld [vmem:[#allocation3 + $0x48] sm:$0xff]  ;;  %v152_v39 = vld [vmem:[#allocation3 + $0x50] sm:$0xff] }
  0x19   :  { %v321_v19 = vsub.f32 %v246_v6, %v1047_v11  ;;  %809 = vmatmul.mubr.msk.f32.vlgmr.msra.gmra.mrb[0].mxu0 %vm54_vm1, %v45_v12  ;;  %877 = vmatprep.subr.bf16.mxu1 %v876_v16  ;;  %v888_v35 = vpack.c.bf16 %v149_v31, %v148_v30  ;;  %v892_v38 = vpack.c.bf16 %v151_v37, %v150_v36  ;;  %v153_v40 = vld [vmem:[#allocation3 + $0x58] sm:$0xff]  ;;  %v154_v42 = vld [vmem:[#allocation3 + $0x60] sm:$0xff]  ;;  %v155_v43 = vld [vmem:[#allocation3 + $0x68] sm:$0xff] }
  0x1a   :  { %847 = vmatpush3.msra.mxu0 %v1044_v9  ;;  %v343_v24 = vand.u32 4294901760, %v342_v18  ;;  %879 = vmatpush3.bf16.msra.mxu1 %v876_v16  ;;  %v332_v25 = vand.u32 4294901760, %v331_v22  ;;  %v896_v41 = vpack.c.bf16 %v153_v40, %v152_v39  ;;  %v900_v44 = vpack.c.bf16 %v155_v43, %v154_v42  ;;  %v156_v45 = vld [vmem:[#allocation3 + $0x70] sm:$0xff]  ;;  %v157_v46 = vld [vmem:[#allocation3 + $0x78] sm:$0xff]  ;;  %v762_v48 = vld [vmem:[%s1095_s3] ss:$0 sm:$0xff] }
  0x1b   :  { %v322_v23 = vand.u32 4294901760, %v321_v19  ;;  %881 = vmatprep.subr.bf16.mxu1 %v880_v17  ;;  %v904_v47 = vpack.c.bf16 %v157_v46, %v156_v45  ;;  %v766_v57 = vld [vmem:[%s1097_s5] ss:$0 sm:$0xff]  ;;  %s975_s3 = smov [#allocation6]  }
  0x1c   :  { %v344_v28 = vsub.f32 %v342_v18, %v343_v24  ;;  %v333_v29 = vsub.f32 %v331_v22, %v332_v25  ;;  %s750_s25 = sshll.u32 %s975_s3, 4  ;;  %s751_s25 = int_to_ptr.vmem [resolvable:$true] %s750_s25 }
  0x1d   :  { %v323_v27 = vsub.f32 %v321_v19, %v322_v23  ;;  %s946_s26 = scalar_lea.vmem %s751_s25, 256  ;;  %p951_p9 = scmp.lt.s32.totalorder %s751_s25, %s751_s25 }
  0x1e   :  { %v345_v33 = vand.u32 4294901760, %v344_v28  ;;  %883 = vmatpush3.bf16.msra.mxu1 %v880_v17  ;;  %v334_v34 = vand.u32 4294901760, %v333_v29  ;;  %p947_p8 = scmp.ne.s32.totalorder %s751_s25, %s946_s26  ;;  %p952_p10 = scmp.lt.s32.totalorder %s946_s26, %s946_s26 }
  0x1f   :  { %v324_v32 = vand.u32 4294901760, %v323_v27  ;;  %885 = vmatprep.subr.bf16.mxu1 %v884_v26 }
  0x20   :  { %851 = vmatprep.subr.mxu0 %v345_v33  ;;  %p953_p11 = por %p952_p10, %p951_p9 }
  0x21   :  { %848 = vmatprep.mubr.f32.mxu0 %v324_v32 }
  0x22   :  { %849 = vmatmul.mubr.f32.vlgmr.msra.gmra.mrb[2].mxu0 %v334_v34  ;;  %887 = vmatpush3.bf16.msra.mxu1 %v884_v26  ;;  %p954_p12 = pnand %p953_p11, %p947_p8 }
  0x23   :  { %852 = vmatpush3.msra.mxu0 %v345_v33  ;;  %853 = vmatprep.mubr.f32.mxu0 %v1047_v11 }
  0x24   :  { %856 = vmatprep.subr.mxu0 %v342_v18  ;;  %889 = vmatprep.subr.bf16.mxu1 %v888_v35 }
  0x26   :  { %891 = vmatpush3.bf16.msra.mxu1 %v888_v35 }
  0x27   :  { %893 = vmatprep.subr.bf16.mxu1 %v892_v38 }
  0x2a   :  { %854 = vmatmul.mubr.f32.vlgmr.msra.gmra.mrb[2].mxu0 %v1050_v15  ;;  %895 = vmatpush3.bf16.msra.mxu1 %v892_v38 }
  0x2b   :  { %857 = vmatpush3.msra.mxu0 %v342_v18  ;;  %858 = vmatprep.mubr.f32.mxu0 %v321_v19 }
  0x2c   :  { %861 = vmatprep.subr.mxu0 %v1044_v9  ;;  %897 = vmatprep.subr.bf16.mxu1 %v896_v41 }
  0x2e   :  { %899 = vmatpush3.bf16.msra.mxu1 %v896_v41 }
  0x2f   :  { %901 = vmatprep.subr.bf16.mxu1 %v900_v44 }
  0x32   :  { %859 = vmatmul.mubr.f32.vlgmr.msra.gmra.mrb[2].mxu0 %v331_v22  ;;  %903 = vmatpush3.bf16.msra.mxu1 %v900_v44 }
  0x33   :  { %862 = vmatpush3.msra.mxu0 %v1044_v9  ;;  %863 = vmatprep.mubr.f32.mxu0 %v322_v23 }
  0x34   :  { %866 = vmatprep.subr.mxu0 %v343_v24  ;;  %905 = vmatprep.subr.bf16.mxu1 %v904_v47 }
  0x36   :  { %907 = vmatpush3.bf16.msra.mxu1 %v904_v47 }
  0x3a   :  { %864 = vmatmul.mubr.f32.vlgmr.msra.gmra.mrb[2].mxu0 %v332_v25 }
  0x3b   :  { %867 = vmatpush3.msra.mxu0 %v343_v24  ;;  %868 = vmatprep.mubr.f32.mxu0 %v1047_v11 }
  0x3c   :  { %871 = vmatprep.subr.mxu0 %v1044_v9 }
  0x42   :  { %869 = vmatmul.mubr.f32.vlgmr.msra.gmra.mrb[2].mxu0 %v1050_v15 }
  0x43   :  { %872 = vmatpush3.msra.mxu0 %v1044_v9  ;;  %873 = vmatprep.mubr.f32.mxu0 %v1047_v11 }
  0x4a   :  { %874 = vmatmul.mubr.f32.vlgmr.msra.gmra.mrb[2].mxu0 %v1050_v15 }
  0xec   :  { %v810_v49 = vpop.f32.mrb[0].mxu0 }
  0xed   :  { %v137_v50 = vadd.f32 %v810_v49, %v762_v48  ;;  %v131_v51 = vpop.f32.mrb[1].mxu0 }
  0xee   :  { %v132_v52 = vadd.f32 %v762_v48, %v131_v51 }
  0xef   :  { %v141_v54 = vmax.f32 %v137_v50, 0.0 }
  0xf0   :  { %v140_v53 = vmax.f32 %v132_v52, 0.0 }
  0xf2   :  { %843 = vmatprep.mubr.f32.mxu1 %v140_v53 }
  0xf3   :  { %844 = vmatmul.mubr.f32.vlgmr.msra.gmra.mrb[0].mxu1 %v141_v54 }
 0x11d   :  { %v875_v55 = vpop.f32.mrb[2].mxu0 }
 0x11e   :  { %v733_v56 = vpop.f32.mrb[3].mxu0 }
 0x1c6   :  { %v845_v58 = vpop.f32.mrb[0].mxu1 }
 0x1c7   :  { %v239_v60 = vadd.f32 %v845_v58, %v766_v57  ;;  %v233_v61 = vpop.f32.mrb[1].mxu1 }
 0x1c8   :  { %v234_v62 = vadd.f32 %v766_v57, %v233_v61 }
 0x1c9   :  { %v244_v63 = vmul.f32 %v242_v59, %v239_v60 }
 0x1ca   :  { %v243_v0 = vmul.f32 %v242_v59, %v234_v62 }
 0x1cb   :  { %v908_v1 = vadd.f32 %v875_v55, %v244_v63 }
 0x1cc   :  { %v909_v2 = vadd.f32 %v733_v56, %v243_v0 }
 0x1cd   :  { %744 = vst [vmem:[#allocation6 + $0x8] sm:$0xff] %v908_v1 }
 0x1ce   :  { %743 = vst [vmem:[#allocation6] sm:$0xff] %v909_v2 }
 0x1cf   :  { %957 = shalt.err (!%p954_p12)
}
 0x1d0   :  { %s958_s27 = scalar_lea.hbm %s1099_s7, 256 }
 0x1d1   :  { %p959_p13 = scmp.ne.s32.totalorder %s1099_s7, %s958_s27  ;;  %p962_p0 = scmp.lt.u32.totalorder %s958_s27, %s1099_s7 }
 0x1d3   :  { %p964_p1 = pnand %p962_p0, %p959_p13 }
 0x1d5   :  { %967 = shalt.err (!%p964_p1)
}
 0x1d6   :  { %756 = dma.vmem_to_hbm [thread:$0]  %s751_s25, 256, %s1099_s7, [#allocation5], %s973_s11, %s973_s11, %s974_s12  }
 0x1d7   :  { %970 = dma.done.wait [#allocation5], 256  }
 0x1d8   :  { %971 = vsyncadd [#allocation5], 4294967040 }
 0x1d9   :  { %760 = vsyncpa [#allocation4], 1 }
 0x1da   :  { %761 = vsyncpa [#allocation5], 1 }

</bundles_post_ra>
